<compile_context>
chip_gen: v7x
topology: tpu7x:2x2x1
jax: 0.10.0
libtpu: 0.0.40
codegen_flags: <defaults>
</compile_context>

<pallas_src>
import jax
import jax.numpy as jnp
from jax.experimental import pallas as pl
from jax.experimental.pallas import tpu as pltpu

_LOG_2PI = 1.8378770664093453          # log(2*pi)
_MIN_SCALE = 3.1622776601683794e-04    # sqrt(1e-7)
_PAD_LOGIT = -60000.0                  # exp()/softplus() underflow exactly to 0,
                                       # (z/scale)^2 stays finite in f32 -> padded
                                       # elements contribute exactly 0 to the sum.


def _ziln_loss_kernel(logits_ref, labels_ref, out_ref):
    # logits_ref : (C, T, 8, 128)   channel-major, sublane/lane packed
    # labels_ref : (T, 8, 128)
    # out_ref    : (1, 8, 128)      resident vector accumulator (per parallel cell)
    step = pl.program_id(1)

    @pl.when(step == 0)
    def _init():
        out_ref[...] = jnp.zeros_like(out_ref)

    y = labels_ref[...].astype(jnp.float32)                    # (T, 8, 128)
    positive = (y > 5.0).astype(jnp.float32)

    # Stable binary_cross_entropy_with_logits (per element, reduced later).
    x0 = logits_ref[0].astype(jnp.float32)                     # (T, 8, 128)
    bce = (jnp.maximum(x0, 0.0) - x0 * positive
           + jnp.log1p(jnp.exp(-jnp.abs(x0))))

    loc = logits_ref[1].astype(jnp.float32)                    # (T, 8, 128)
    safe_y = positive * y + (1.0 - positive)
    log_y = jnp.log(safe_y)
    z = log_y - loc

    s = logits_ref[2:].astype(jnp.float32)                     # (C-2, T, 8, 128)
    scale = jnp.maximum(jax.nn.softplus(s), _MIN_SCALE)
    # LogNormal(loc, scale).log_prob(safe_y)
    log_prob = (-0.5 * jnp.square(z / scale)
                - jnp.log(scale) - 0.5 * _LOG_2PI - log_y)     # (C-2, T, 8, 128)
    reg = -jnp.mean(positive * log_prob, axis=0)               # (T, 8, 128)

    per_elem = bce + reg                                       # (T, 8, 128)
    # Pure VPU accumulation over the outer (chunk) axis; no cross-lane reduce.
    out_ref[...] += jnp.sum(per_elem, axis=0, keepdims=True)   # (1, 8, 128)


def zero_inflated_lognormal_loss(logits: jax.Array, labels: jax.Array,
                                 *, chunk_tile: int = 256) -> jax.Array:
    """Pallas TPU implementation of the zero-inflated lognormal loss (scalar).

    chunk_tile = number of 1024-element (8x128) chunks processed per grid step.
    """
    *lead, c = logits.shape
    assert c >= 3, "logits last dim must hold (positive_logit, loc, scale...)"
    if labels.shape == tuple(lead):
        labels = labels[..., None]
    assert labels.shape == (*lead, 1), (labels.shape, lead)

    if not jnp.issubdtype(logits.dtype, jnp.floating):
        logits = logits.astype(jnp.float32)

    n = 1
    for d in lead:
        n *= d
    assert n > 0

    # ---- grid / padding geometry (all static) -------------------------------
    chunk = 8 * 128                                   # one full (8,128) vreg tile
    chunks = pl.cdiv(n, chunk)                        # 1024-element chunks
    ncores = 2                                        # v7x has 2 TCs; free elsewhere
    cells = max(ncores, pl.cdiv(chunks, int(chunk_tile)))
    cells = ncores * pl.cdiv(cells, ncores)           # total grid cells, mult. of 2
    tile_g = pl.cdiv(chunks, cells)                   # chunks per grid cell
    chunks_pad = cells * tile_g                       # padded chunk count (< cells waste)
    steps = cells // ncores                           # sequential steps per core
    n_pad = chunks_pad * chunk

    # ---- channel-major, sublane/lane-packed relayout -------------------------
    # TODO(synk): this transpose+pad is one extra HBM round trip; emit logits
    # channel-major from the producing matmul (or fuse via allow_input_fusion)
    # to remove ~half the end-to-end HBM traffic of this memory-bound loss.
    logits_cn = logits.reshape(n, c).T                                   # (C, N)
    logits_cn = jnp.pad(logits_cn, ((0, 0), (0, n_pad - n)),
                        constant_values=_PAD_LOGIT)
    logits_t = logits_cn.reshape(c, chunks_pad, 8, 128)

    labels_flat = jnp.pad(labels.reshape(n), (0, n_pad - n))             # zeros
    labels_t = labels_flat.reshape(chunks_pad, 8, 128)

    nsc = c - 2
    cost = pl.CostEstimate(
        flops=int((18 + 14 * nsc) * n_pad),
        transcendentals=int((3 + 3 * nsc) * n_pad),
        bytes_accessed=int(logits_t.size * logits_t.dtype.itemsize
                           + labels_t.size * labels_t.dtype.itemsize
                           + ncores * chunk * 4),
    )

    partial = pl.pallas_call(
        _ziln_loss_kernel,
        out_shape=jax.ShapeDtypeStruct((ncores, 8, 128), jnp.float32),
        grid_spec=pl.GridSpec(
            grid=(ncores, steps),
            in_specs=[
                pl.BlockSpec((c, tile_g, 8, 128),
                             lambda p, i: (0, p * steps + i, 0, 0)),
                pl.BlockSpec((tile_g, 8, 128),
                             lambda p, i: (p * steps + i, 0, 0)),
            ],
            out_specs=pl.BlockSpec((1, 8, 128), lambda p, i: (p, 0, 0)),
        ),
        compiler_params=pltpu.CompilerParams(
            dimension_semantics=("parallel", "arbitrary"),
            vmem_limit_bytes=32 * 1024 * 1024,
        ),
        cost_estimate=cost,
    )(logits_t, labels_t)

    # mean(cls) + mean(reg) == sum(bce + reg) / N ; padding contributed 0.
    return partial.sum() / jnp.float32(n)


def _reference(logits, labels):
    labels = labels.astype(jnp.float32)
    positive = (labels > 5).astype(jnp.float32)
    logits = logits.astype(jnp.float32)
    pos_logits = logits[..., :1]
    bce = (jnp.maximum(pos_logits, 0.0) - pos_logits * positive
           + jnp.log1p(jnp.exp(-jnp.abs(pos_logits))))
    classification_loss = jnp.mean(bce)
    loc = logits[..., 1:2]
    scale = jnp.maximum(jax.nn.softplus(logits[..., 2:]),
                        jnp.sqrt(jnp.float32(1e-7)))
    safe_labels = positive * labels + (1.0 - positive)
    log_y = jnp.log(safe_labels)
    log_prob = (-jnp.square(log_y - loc) / (2.0 * jnp.square(scale))
                - jnp.log(scale) - 0.5 * jnp.log(2.0 * jnp.pi) - log_y)
    regression_loss = -jnp.mean(positive * log_prob, axis=-1)
    return jnp.mean(classification_loss + regression_loss)


if __name__ == "__main__":
    key = jax.random.PRNGKey(0)
    k1, k2, k3, k4, k5, k6 = jax.random.split(key, 6)

    # Small shapes consistent with the module: batch=2, seq=8, C=3, labels [...,1].
    logits = jax.random.normal(k1, (2, 8, 3), dtype=jnp.float32)
    labels = jax.random.uniform(k2, (2, 8, 1), dtype=jnp.float32,
                                minval=0.0, maxval=10.0)
    loss = jax.block_until_ready(zero_inflated_lognormal_loss(logits, labels))
    ref = _reference(logits, labels)
    assert loss.shape == (), loss.shape
    assert jnp.allclose(loss, ref, rtol=1e-5, atol=1e-5), (float(loss), float(ref))

    # Exercise the zero-contribution padding path (n not a multiple of 1024).
    logits2 = jax.random.normal(k3, (2, 100, 3), dtype=jnp.float32)
    labels2 = jax.random.uniform(k4, (2, 100, 1), dtype=jnp.float32,
                                 minval=0.0, maxval=10.0)
    loss2 = jax.block_until_ready(zero_inflated_lognormal_loss(logits2, labels2))
    ref2 = _reference(logits2, labels2)
    assert jnp.allclose(loss2, ref2, rtol=1e-5, atol=1e-5), (float(loss2), float(ref2))

    # Exercise multi-step accumulation over the 'arbitrary' axis + both
    # parallel cells + padding, by forcing a tiny chunk tile.
    logits3 = jax.random.normal(k5, (4, 3000, 3), dtype=jnp.float32)
    labels3 = jax.random.uniform(k6, (4, 3000, 1), dtype=jnp.float32,
                                 minval=0.0, maxval=10.0)
    loss3 = jax.block_until_ready(
        zero_inflated_lognormal_loss(logits3, labels3, chunk_tile=2))
    ref3 = _reference(logits3, labels3)
    assert jnp.allclose(loss3, ref3, rtol=1e-4, atol=1e-5), (float(loss3), float(ref3))

    print("KERNEL_OK")
</pallas_src>

<mosaic_0001>
module attributes {stable_mosaic.version = 11 : i64} {
  func.func @_ziln_loss_kernel(%arg0: i32, %arg1: i32, %arg2: memref<3x1x8x128xf32, #tpu.memory_space<vmem>>, %arg3: memref<1x8x128xf32, #tpu.memory_space<vmem>>, %arg4: memref<1x8x128xf32, #tpu.memory_space<vmem>>) attributes {dimension_semantics = [#tpu.dimension_semantics<parallel>, #tpu.dimension_semantics<arbitrary>], iteration_bounds = array<i64: 2, 1>, scalar_prefetch = 0 : i64, scratch_operands = 0 : i64, tpu.core_type = #tpu.core_type<tc>, window_params = [{transform_indices = @transform_0, window_bounds = array<i64: 3, 1, 8, 128>}, {transform_indices = @transform_1, window_bounds = array<i64: 1, 8, 128>}, {transform_indices = @transform_2, window_bounds = array<i64: 1, 8, 128>}]} {
    %c0_i32 = arith.constant 0 : i32
    %0 = arith.cmpi eq, %arg1, %c0_i32 : i32
    %1 = arith.extui %0 : i1 to i32
    %c0_i32_0 = arith.constant 0 : i32
    %2 = arith.cmpi ne, %1, %c0_i32_0 : i32
    scf.if %2 {
      %cst_31 = arith.constant 0.000000e+00 : f32
      %69 = vector.broadcast %cst_31 : f32 to vector<1x8x128xf32>
      %c0_32 = arith.constant 0 : index
      %c0_33 = arith.constant 0 : index
      %c0_34 = arith.constant 0 : index
      %70 = vector.load %arg4[%c0_32, %c0_33, %c0_34] : memref<1x8x128xf32, #tpu.memory_space<vmem>>, vector<1x8x128xf32>
      tpu.vector_store %arg4[%c0_32, %c0_33, %c0_34], %69 {strides = array<i32>} : memref<1x8x128xf32, #tpu.memory_space<vmem>>, vector<1x8x128xf32>,
    } else {
    }
    %c0 = arith.constant 0 : index
    %c0_1 = arith.constant 0 : index
    %c0_2 = arith.constant 0 : index
    %3 = vector.load %arg3[%c0, %c0_1, %c0_2] : memref<1x8x128xf32, #tpu.memory_space<vmem>>, vector<1x8x128xf32>
    %cst = arith.constant 5.000000e+00 : f32
    %4 = vector.broadcast %cst : f32 to vector<1x8x128xf32>
    %5 = arith.cmpf ogt, %3, %4 : vector<1x8x128xf32>
    %6 = arith.extui %5 : vector<1x8x128xi1> to vector<1x8x128xi32>
    %7 = arith.sitofp %6 : vector<1x8x128xi32> to vector<1x8x128xf32>
    %c0_3 = arith.constant 0 : index
    %c0_4 = arith.constant 0 : index
    %c0_5 = arith.constant 0 : index
    %c0_6 = arith.constant 0 : index
    %8 = vector.load %arg2[%c0_3, %c0_4, %c0_5, %c0_6] : memref<3x1x8x128xf32, #tpu.memory_space<vmem>>, vector<1x1x8x128xf32>
    %9 = vector.shape_cast %8 : vector<1x1x8x128xf32> to vector<1x8x128xf32>
    %cst_7 = arith.constant 0.000000e+00 : f32
    %10 = vector.broadcast %cst_7 : f32 to vector<1x8x128xf32>
    %11 = arith.maximumf %9, %10 : vector<1x8x128xf32>
    %12 = arith.mulf %9, %7 : vector<1x8x128xf32>
    %13 = arith.subf %11, %12 : vector<1x8x128xf32>
    %14 = math.absf %9 : vector<1x8x128xf32>
    %cst_8 = arith.constant 0.000000e+00 : f32
    %15 = vector.broadcast %cst_8 : f32 to vector<1x8x128xf32>
    %16 = arith.subf %15, %14 : vector<1x8x128xf32>
    %17 = math.exp %16 : vector<1x8x128xf32>
    %18 = math.log1p %17 : vector<1x8x128xf32>
    %19 = arith.addf %13, %18 : vector<1x8x128xf32>
    %c1 = arith.constant 1 : index
    %c0_9 = arith.constant 0 : index
    %c0_10 = arith.constant 0 : index
    %c0_11 = arith.constant 0 : index
    %20 = vector.load %arg2[%c1, %c0_9, %c0_10, %c0_11] : memref<3x1x8x128xf32, #tpu.memory_space<vmem>>, vector<1x1x8x128xf32>
    %21 = vector.shape_cast %20 : vector<1x1x8x128xf32> to vector<1x8x128xf32>
    %22 = arith.mulf %7, %3 : vector<1x8x128xf32>
    %cst_12 = arith.constant 1.000000e+00 : f32
    %23 = vector.broadcast %cst_12 : f32 to vector<1x8x128xf32>
    %24 = arith.subf %23, %7 : vector<1x8x128xf32>
    %25 = arith.addf %22, %24 : vector<1x8x128xf32>
    %26 = math.log %25 : vector<1x8x128xf32>
    %27 = arith.subf %26, %21 : vector<1x8x128xf32>
    %c2 = arith.constant 2 : index
    %c0_13 = arith.constant 0 : index
    %c0_14 = arith.constant 0 : index
    %c0_15 = arith.constant 0 : index
    %28 = vector.load %arg2[%c2, %c0_13, %c0_14, %c0_15] : memref<3x1x8x128xf32, #tpu.memory_space<vmem>>, vector<1x1x8x128xf32>
    %cst_16 = arith.constant 0.000000e+00 : f32
    %29 = vector.broadcast %cst_16 : f32 to vector<1x1x8x128xf32>
    %30 = arith.maximumf %28, %29 : vector<1x1x8x128xf32>
    %31 = vector.broadcast %cst_16 : f32 to vector<1x1x8x128xf32>
    %32 = arith.subf %28, %31 : vector<1x1x8x128xf32>
    %33 = arith.cmpf one, %32, %32 : vector<1x1x8x128xf32>
    %34 = vector.broadcast %cst_16 : f32 to vector<1x1x8x128xf32>
    %35 = arith.addf %28, %34 : vector<1x1x8x128xf32>
    %36 = math.absf %32 : vector<1x1x8x128xf32>
    %cst_17 = arith.constant 0.000000e+00 : f32
    %37 = vector.broadcast %cst_17 : f32 to vector<1x1x8x128xf32>
    %38 = arith.subf %37, %36 : vector<1x1x8x128xf32>
    %39 = math.exp %38 : vector<1x1x8x128xf32>
    %40 = math.log1p %39 : vector<1x1x8x128xf32>
    %41 = arith.addf %30, %40 : vector<1x1x8x128xf32>
    %42 = arith.select %33, %35, %41 : vector<1x1x8x128xi1>, vector<1x1x8x128xf32>
    %cst_18 = arith.constant 3.16227757E-4 : f32
    %43 = vector.broadcast %cst_18 : f32 to vector<1x1x8x128xf32>
    %44 = arith.maximumf %42, %43 : vector<1x1x8x128xf32>
    %45 = vector.shape_cast %27 : vector<1x8x128xf32> to vector<1x1x8x128xf32>
    %46 = arith.divf %45, %44 : vector<1x1x8x128xf32>
    %47 = arith.mulf %46, %46 : vector<1x1x8x128xf32>
    %cst_19 = arith.constant -5.000000e-01 : f32
    %48 = vector.broadcast %cst_19 : f32 to vector<1x1x8x128xf32>
    %49 = arith.mulf %48, %47 : vector<1x1x8x128xf32>
    %50 = math.log %44 : vector<1x1x8x128xf32>
    %51 = arith.subf %49, %50 : vector<1x1x8x128xf32>
    %cst_20 = arith.constant 0.918938517 : f32
    %52 = vector.broadcast %cst_20 : f32 to vector<1x1x8x128xf32>
    %53 = arith.subf %51, %52 : vector<1x1x8x128xf32>
    %54 = vector.shape_cast %26 : vector<1x8x128xf32> to vector<1x1x8x128xf32>
    %55 = arith.subf %53, %54 : vector<1x1x8x128xf32>
    %56 = vector.shape_cast %7 : vector<1x8x128xf32> to vector<1x1x8x128xf32>
    %57 = arith.mulf %56, %55 : vector<1x1x8x128xf32>
    %cst_21 = arith.constant dense<0.000000e+00> : vector<1x8x128xf32>
    %58 = vector.multi_reduction <add>, %57, %cst_21 [0] : vector<1x1x8x128xf32> to vector<1x8x128xf32>
    %cst_22 = arith.constant 1.000000e+00 : f32
    %59 = vector.broadcast %cst_22 : f32 to vector<1x8x128xf32>
    %60 = arith.divf %58, %59 : vector<1x8x128xf32>
    %cst_23 = arith.constant 0.000000e+00 : f32
    %61 = vector.broadcast %cst_23 : f32 to vector<1x8x128xf32>
    %62 = arith.subf %61, %60 : vector<1x8x128xf32>
    %63 = arith.addf %19, %62 : vector<1x8x128xf32>
    %c0_24 = arith.constant 0 : index
    %c0_25 = arith.constant 0 : index
    %c0_26 = arith.constant 0 : index
    %64 = vector.load %arg4[%c0_24, %c0_25, %c0_26] : memref<1x8x128xf32, #tpu.memory_space<vmem>>, vector<1x8x128xf32>
    %cst_27 = arith.constant dense<0.000000e+00> : vector<8x128xf32>
    %65 = vector.multi_reduction <add>, %63, %cst_27 [0] : vector<1x8x128xf32> to vector<8x128xf32>
    %66 = vector.shape_cast %65 : vector<8x128xf32> to vector<1x8x128xf32>
    %67 = arith.addf %64, %66 : vector<1x8x128xf32>
    %c0_28 = arith.constant 0 : index
    %c0_29 = arith.constant 0 : index
    %c0_30 = arith.constant 0 : index
    %68 = vector.load %arg4[%c0_28, %c0_29, %c0_30] : memref<1x8x128xf32, #tpu.memory_space<vmem>>, vector<1x8x128xf32>
    tpu.vector_store %arg4[%c0_28, %c0_29, %c0_30], %67 {strides = array<i32>} : memref<1x8x128xf32, #tpu.memory_space<vmem>>, vector<1x8x128xf32>,
    return
  }
  func.func @transform_0(%arg0: i32, %arg1: i32) -> (i32, i32, i32, i32) {
    %c1_i32 = arith.constant 1 : i32
    %0 = arith.muli %arg0, %c1_i32 : i32
    %1 = arith.addi %0, %arg1 : i32
    %c0_i32 = arith.constant 0 : i32
    %c0_i32_0 = arith.constant 0 : i32
    %c0_i32_1 = arith.constant 0 : i32
    %c0_i32_2 = arith.constant 0 : i32
    return %c0_i32, %1, %c0_i32_0, %c0_i32_1 : i32, i32, i32, i32
  }
  func.func @transform_1(%arg0: i32, %arg1: i32) -> (i32, i32, i32) {
    %c1_i32 = arith.constant 1 : i32
    %0 = arith.muli %arg0, %c1_i32 : i32
    %1 = arith.addi %0, %arg1 : i32
    %c0_i32 = arith.constant 0 : i32
    %c0_i32_0 = arith.constant 0 : i32
    %c0_i32_1 = arith.constant 0 : i32
    return %1, %c0_i32, %c0_i32_0 : i32, i32, i32
  }
  func.func @transform_2(%arg0: i32, %arg1: i32) -> (i32, i32, i32) {
    %c0_i32 = arith.constant 0 : i32
    %c0_i32_0 = arith.constant 0 : i32
    %c0_i32_1 = arith.constant 0 : i32
    return %arg0, %c0_i32, %c0_i32_0 : i32, i32, i32
  }
}

</mosaic_0001>

<bundles_post_ra>
// kernel: tpu_custom_call.1
= control target key start
LH: loop header
LB: loop body
LE: loop exit
PB: predicated region body
PF: predicated region fallthrough
CT: control target
= control target key end

     0   :  { %7 = vsyncpa [#allocation3], 0  ;;  %s908_s0 = inlined_call_operand.hbm [shape: f32[3,2,8,128], index: 0, kind: input, shape index: {}]   ;;  %s909_s1 = inlined_call_operand.hbm [shape: f32[2,8,128], index: 1, kind: input, shape index: {}]   ;;  %s910_s2 = inlined_call_operand.hbm [shape: f32[2,8,128], index: 2, kind: output, shape index: {}]  }
   0x1   :  { %9 = vsyncpa [#allocation3 + $0x1], 0 }
   0x2   :  { %10 = vsyncpa [#allocation6], 0 }
   0x3   :  { %12 = vsyncpa [#allocation6 + $0x1], 0 }
   0x4   :  { %13 = vsyncpa [#allocation4], 0 }
   0x5   :  { %15 = vsyncpa [#allocation4 + $0x1], 0  ;;  %s683_s9 = smov 0   ;;  %s685_s10 = smov 0  }
   0x6   :  { %s687_s11 = smov 0   ;;  %s689_s12 = smov 0  }
   0x7   :  { %s691_s13 = smov 0   ;;  %s693_s14 = smov 0  }
   0x8 LB: > { %s408_s15 = sadd.s32 4294967295, %s659_s14   ;;  %s409_s16 = sadd.s32 4294967294, %s659_s14   ;;  %s659_s14 = sphi %s693_s14, %s21_s14   ;;  %s655_s13 = sphi %s691_s13, %s928_s13   ;;  %s651_s12 = sphi %s689_s12, %s927_s12   ;;  %s647_s11 = sphi %s687_s11, %s926_s11   ;;  %s643_s10 = sphi %s685_s10, %s925_s10   ;;  %s639_s9 = sphi %s683_s9, %s924_s9  }
   0x9   : > { %s33_s17 = sadd.s32 1, %s655_s13  ;;  %s42_s18 = sadd.s32 1, %s647_s11 }
   0xa   : > { %p35_p0 = scmp.ge.s32.totalorder %s33_s17, 2  ;;  %p49_p1 = scmp.ne.s32.totalorder %s647_s11, %s643_s10 }
   0xb   : > { %p50_p2 = scmp.eq.s32.totalorder %s659_s14, 0  ;;  %p55_p3 = scmp.ne.s32.totalorder %s643_s10, %s639_s9 }
   0xc   : > { %s930_s17 = smov (%p35_p0, %s33_s17), 0  ;;  %p56_p5 = scmp.eq.s32.totalorder %s408_s15, 0 }
   0xd   : > { %p724_p4 = por %p50_p2, %p49_p1  ;;  %s39_s20 = ssub.s32 %s655_s13, %s930_s17 }
   0xe   : > { %p107_p6 = scmp.eq.s32.totalorder %s408_s15, 1  ;;  %p40_p7 = scmp.eq.s32.totalorder %s39_s20, 0 }
   0xf   : > { %p730_p8 = por %p56_p5, %p55_p3  ;;  %p113_p10 = scmp.eq.s32.totalorder %s409_s16, 1 }
  0x10   : > { %p734_p9 = por %p107_p6, %p49_p1  ;;  %p445_p13 = scmp.lt.s32.totalorder %s659_s14, 2 }
  0x11   : > { %s914_s21 = scalar_select %p730_p8, 1, 0 }
  0x12   : > { %s915_s22 = scalar_select %p734_p9, 1, 0 }
  0x13   : > { %s739_s23 = scalar_select %p40_p7, %s647_s11, %s42_s18  }
  0x14   : > { %p741_p11 = por %p113_p10, %p55_p3  ;;  %s748_s25 = sand.u32 1, %s647_s11  }
  0x15   : > { %s426_s26 = smul.u32 24, %s748_s25  ;;  %s412_s27 = sshll.u32 %s655_s13, 7 }
  0x16   : > { %s916_s24 = scalar_select %p741_p11, 1, 0 }
  0x17   : > { %p754_p0 = pnand %p445_p13, %p724_p4  ;;  %s763_s3 = scalar_lea.hbm %s908_s0, %s412_s27 }
  0x18   : > { %s137_s4 = scalar_lea.vmem [#allocation2], %s426_s26  ;;  %s134_s6 = scalar_lea.sflag [#allocation3], %s748_s25 }
  0x19   : > { %s144_s5 = sshll.u32 %s137_s4, 4  ;;  %s513_s7 = scalar_lea.hbm %s763_s3, 384  ;;  %s765_s5 = int_to_ptr.vmem [resolvable:$true] %s144_s5 }
  0x1a   : > { %p514_p1 = scmp.ne.s32.totalorder %s763_s3, %s513_s7  ;;  %p515_p2 = pneg %p754_p0 }
  0x1b   : > { %s518_s16 = scalar_lea.hbm %s908_s0, 768  ;;  %p519_p5 = scmp.lt.u32.totalorder %s763_s3, %s908_s0 }
  0x1c   : > { %p516_p3 = pnand %p515_p2, %p514_p1  ;;  %p520_p6 = scmp.lt.u32.totalorder %s518_s16, %s513_s7 }
  0x1d   : > { %p522_p10 = scmp.lt.u32.totalorder %s513_s7, %s763_s3 }
  0x1e   : > { %p517_p4 = pneg %p516_p3  ;;  %p521_p7 = por %p520_p6, %p519_p5 }
  0x20   : > { %p523_p13 = por %p522_p10, %p521_p7 }
  0x22   : > { %p524_p12 = pnand %p523_p13, %p517_p4 }
  0x24   : > { %527 = shalt.err (!%p524_p12)
}
  0x25   : > { %s528_s20 = scalar_lea.vmem %s765_s5, 384  ;;  %s661_s26 = smov [#allocation2]  }
  0x26   : > { %p529_p1 = scmp.ne.s32.totalorder %s765_s5, %s528_s20  ;;  %s533_s29 = sshll.u32 %s661_s26, 4  ;;  %s534_s29 = int_to_ptr.vmem [resolvable:$false] %s533_s29 }
  0x27   : > { %s535_s30 = scalar_lea.vmem %s534_s29, 768  ;;  %p536_p9 = scmp.lt.s32.totalorder %s765_s5, %s534_s29 }
  0x28   : > { %p531_p3 = pnand %p529_p1, %p515_p2  ;;  %p537_p5 = scmp.lt.s32.totalorder %s535_s30, %s528_s20 }
  0x2a   : > { %p532_p11 = pneg %p531_p3  ;;  %p538_p6 = por %p537_p5, %p536_p9 }
  0x2c   : > { %p539_p7 = pnand %p538_p6, %p532_p11 }
  0x2e   : > { %542 = shalt.err (!%p539_p7)
}
  0x2f   : > { %s662_s4 = smov 256   ;;  %s663_s7 = smov 128  }
  0x30   : > { %s664_s8 = smov 8   ;;  %p415_p12 = scmp.ge.s32.totalorder %s659_s14, 1 }
  0x31   : > { %437 = dma.hbm_to_vmem [thread:$0]  (!%p754_p0), %s763_s3, 384, %s765_s5, %s134_s6, %s662_s4, %s663_s7, %s664_s8  }
  0x32   : > { %p171_p9 = scmp.lt.s32.totalorder %s659_s14, 3  ;;  %s413_s15 = sshll.u32 %s748_s25, 3 }
  0x33   : > { %s807_s20 = scalar_lea.hbm %s909_s1, %s412_s27  ;;  %s158_s26 = scalar_lea.vmem [#allocation5], %s413_s15 }
  0x34   : > { %p798_p11 = pnand %p415_p12, %p171_p9  ;;  %s166_s29 = sshll.u32 %s158_s26, 4  ;;  %s167_s29 = int_to_ptr.vmem [resolvable:$true] %s166_s29 }
  0x35   : > { %s155_s3 = scalar_lea.sflag [#allocation6], %s748_s25  ;;  %s543_s5 = scalar_lea.hbm %s807_s20, 128 }
  0x36   : > { %s918_s16 = scalar_select %p798_p11, 1, 0 }
  0x37   : > { %p544_p4 = scmp.ne.s32.totalorder %s807_s20, %s543_s5  ;;  %s548_s4 = scalar_lea.hbm %s909_s1, 256 }
  0x38   : > { %p549_p1 = scmp.lt.u32.totalorder %s807_s20, %s909_s1  ;;  %p550_p3 = scmp.lt.u32.totalorder %s548_s4, %s543_s5 }
  0x39   : > { %p546_p10 = pnand %p544_p4, %p515_p2  ;;  %p552_p6 = scmp.lt.u32.totalorder %s543_s5, %s807_s20 }
  0x3a   : > { %p551_p5 = por %p550_p3, %p549_p1 }
  0x3b   : > { %p547_p13 = pneg %p546_p10 }
  0x3c   : > { %p553_p7 = por %p552_p6, %p551_p5 }
  0x3e   : > { %p554_p12 = pnand %p553_p7, %p547_p13 }
  0x40   : > { %557 = shalt.err (!%p554_p12)
}
  0x41   : > { %s558_s25 = scalar_lea.vmem %s167_s29, 128  ;;  %s665_s8 = smov [#allocation5]  }
  0x42   : > { %p559_p9 = scmp.ne.s32.totalorder %s167_s29, %s558_s25  ;;  %s563_s15 = sshll.u32 %s665_s8, 4  ;;  %s564_s15 = int_to_ptr.vmem [resolvable:$false] %s563_s15 }
  0x43   : > { %s565_s18 = scalar_lea.vmem %s564_s15, 256  ;;  %p566_p8 = scmp.lt.s32.totalorder %s167_s29, %s564_s15 }
  0x44   : > { %p561_p4 = pnand %p559_p9, %p515_p2  ;;  %p567_p11 = scmp.lt.s32.totalorder %s565_s18, %s558_s25 }
  0x46   : > { %p562_p10 = pneg %p561_p4  ;;  %p568_p1 = por %p567_p11, %p566_p8 }
  0x48   : > { %p569_p3 = pnand %p568_p1, %p562_p10 }
  0x4a   : > { %572 = shalt.err (!%p569_p3)
}
  0x4b   : > { %440 = dma.hbm_to_vmem [thread:$0]  (!%p754_p0), %s807_s20, 128, %s167_s29, %s155_s3  }
  0x4c   : > { %p919_p13 = scmp.ne.s32.totalorder %s918_s16, 0 }
  0x4d   : > { %s832_s19 = sand.u32 (!%p919_p13), 1, %s643_s10   ;;  %p920_p8 = scmp.ne.s32.totalorder (!%p919_p13), %s914_s21, 0 }
  0x4e   : > { %175 = sbr.rel (%p919_p13) target bundleno = 171 (0xab), region = 28  ;;  %s178_s5 = scalar_lea.sflag (!%p919_p13), [#allocation3], %s832_s19 }
  0x4f   : > { %s427_s26 = smul.u32 (!%p919_p13), 24, %s832_s19 }
  0x51   : > { %s836_s6 = scalar_lea.vmem (!%p919_p13), [#allocation2], %s427_s26 }
  0x55   : > { %626 = dma.done.wait (%p920_p8), %s178_s5, 384  }
  0x56   : > { %628 = vsyncadd (%p920_p8), %s178_s5, 4294966912  ;;  %s416_s28 = sshll.u32 %s832_s19, 3  ;;  %s187_s16 = scalar_lea.sflag [#allocation6], %s832_s19 }
  0x57   : > { %s190_s20 = scalar_lea.vmem [#allocation5], %s416_s28 }
  0x58   : > { %630 = dma.done.wait (%p920_p8), %s187_s16, 128  }
  0x59   : > { %632 = vsyncadd (%p920_p8), %s187_s16, 4294967168  ;;  %v420_v0 = vld [vmem:[%s836_s6 + $0x10] sm:$0xff]  ;;  %v227_v4 = vld [vmem:[%s836_s6] sm:$0xff]  ;;  %v666_v9 = vmov 0.0   ;;  %s423_s21 = sshll.u32 %s651_s12, 7  ;;  %s215_s29 = scalar_lea.vmem [#allocation7], %s416_s28 }
  0x5a   : > { %v258_v1 = vand.u32 2147483647, %v420_v0  ;;  %v223_v5 = vld [vmem:[%s190_s20] sm:$0xff]  ;;  %v231_v6 = vand.u32 2147483647, %v227_v4  ;;  %v255_v21 = vmax.f32 %v420_v0, 0.0  ;;  %vm256_vm2 = vcmp.ne.f32.partialorder %v420_v0, %v420_v0  ;;  %s859_s27 = scalar_lea.hbm %s910_s2, %s423_s21 }
  0x5b   : > { %vm224_vm0 = vcmp.gt.f32.partialorder %v223_v5, 5.0  ;;  %v419_v31 = vld [vmem:[%s836_s6 + $0x8] sm:$0xff]  ;;  %v228_v42 = vmax.f32 %v227_v4, 0.0  ;;  %s305_s3 = sshll.u32 %s215_s29, 4  ;;  %s292_s7 = scalar_lea.sflag [#allocation4], %s832_s19  ;;  %s861_s3 = int_to_ptr.vmem [resolvable:$true] %s305_s3 }
  0x5c   : > { %v259_v2 = vsub.f32 0.0, %v258_v1  ;;  %v232_v8 = vsub.f32 0.0, %v231_v6  ;;  %v418_v10 = vsel %vm224_vm0, 1.0, %v666_v9  ;;  %s573_s25 = scalar_lea.vmem %s861_s3, 128  ;;  %p921_p2 = scmp.ne.s32.totalorder %s915_s22, 0 }
  0x5d   : > { %v247_v13 = vmul.f32 %v418_v10, %v223_v5  ;;  %v248_v14 = vsub.f32 1.0, %v418_v10  ;;  %v229_v43 = vmul.f32 %v418_v10, %v227_v4  ;;  %p574_p0 = scmp.ne.s32.totalorder %s861_s3, %s573_s25  ;;  %s667_s12 = smov [#allocation7]  }
  0x5e   : > { %v260_v3 = vmul.f32 1.442695, %v259_v2  ;;  %v233_v12 = vmul.f32 1.442695, %v232_v8  ;;  %s577_s8 = sshll.u32 %s667_s12, 4  ;;  %s578_s8 = int_to_ptr.vmem [resolvable:$false] %s577_s8 }
  0x5f   : > { %v249_v16 = vadd.f32 %v248_v14, %v247_v13  ;;  %v230_v48 = vsub.f32 %v228_v42, %v229_v43  ;;  %p575_p11 = pnand %p574_p0, %p921_p2  ;;  %s579_s15 = scalar_lea.vmem %s578_s8, 256 }
  0x60   : > { %499 = vpow2.f32 %v260_v3  ;;  %p580_p6 = scmp.lt.s32.totalorder %s861_s3, %s578_s8  ;;  %p581_p7 = scmp.lt.s32.totalorder %s579_s15, %s573_s25 }
  0x61   : > { %p576_p5 = pneg %p575_p11 }
  0x62   : > { %p582_p12 = por %p581_p7, %p580_p6 }
  0x64   : > { %p583_p9 = pnand %p582_p12, %p576_p5 }
  0x6a   : > { %v500_v7 = vpop.eup %499 }
  0x6b   : > { %v262_v11 = vadd.f32 1.0, %v500_v7  ;;  %v265_v15 = vmul.f32 -0.5, %v500_v7  ;;  %v268_v18 = vand.u32 2147483647, %v500_v7 }
  0x6d   : > { %501 = vlog2.f32 %v262_v11  ;;  %v266_v17 = vadd.f32 1.0, %v265_v15  ;;  %vm269_vm1 = vcmp.lt.f32.partialorder %v268_v18, 0.0004427343 }
  0x6e   : > { %503 = vpow2.f32 %v233_v12 }
  0x6f   : > { %505 = vlog2.f32 %v249_v16  ;;  %v267_v19 = vmul.f32 %v500_v7, %v266_v17 }
  0x77   : > { %v502_v20 = vpop.eup %501 }
  0x78   : > { %v264_v22 = vmul.f32 0.6931472, %v502_v20  ;;  %v504_v25 = vpop.eup %503 }
  0x79   : > { %v235_v28 = vadd.f32 1.0, %v504_v25  ;;  %v506_v29 = vpop.eup %505  ;;  %v238_v33 = vmul.f32 -0.5, %v504_v25  ;;  %v241_v41 = vand.u32 2147483647, %v504_v25 }
  0x7a   : > { %v270_v23 = vsel %vm269_vm1, %v267_v19, %v264_v22  ;;  %v251_v30 = vmul.f32 0.6931472, %v506_v29 }
  0x7b   : > { %v271_v24 = vadd.f32 %v270_v23, %v255_v21  ;;  %v239_v37 = vadd.f32 1.0, %v238_v33  ;;  %vm242_vm3 = vcmp.lt.f32.partialorder %v241_v41, 0.0004427343 }
  0x7c   : > { %v252_v32 = vsub.f32 %v251_v30, %v419_v31 }
  0x7d   : > { %v272_v26 = vsel %vm256_vm2, %v420_v0, %v271_v24  ;;  %v240_v46 = vmul.f32 %v504_v25, %v239_v37 }
  0x7e   : > { %v273_v27 = vmax.f32 %v272_v26, 0.00031622776 }
  0x80   : > { %507 = vrcp.f32 %v273_v27 }
  0x81   : > { %509 = vlog2.f32 %v273_v27 }
  0x82   : > { %511 = vlog2.f32 %v235_v28 }
  0x8a   : > { %v508_v34 = vpop.eup %507 }
  0x8b   : > { %v510_v35 = vpop.eup %509  ;;  %v275_v36 = vmul.f32 %v508_v34, %v252_v32 }
  0x8c   : > { %v512_v38 = vpop.eup %511  ;;  %v279_v40 = vmul.f32 0.6931472, %v510_v35 }
  0x8d   : > { %v276_v39 = vmul.f32 %v275_v36, %v275_v36  ;;  %v237_v45 = vmul.f32 0.6931472, %v512_v38 }
  0x8f   : > { %v277_v44 = vmul.f32 -0.5, %v276_v39  ;;  %v243_v50 = vsel %vm242_vm3, %v240_v46, %v237_v45 }
  0x90   : > { %v244_v53 = vadd.f32 %v243_v50, %v230_v48 }
  0x91   : > { %v280_v47 = vsub.f32 %v277_v44, %v279_v40 }
  0x93   : > { %v421_v49 = vadd.f32 -0.9189385, %v280_v47 }
  0x95   : > { %v282_v51 = vsub.f32 %v421_v49, %v251_v30 }
  0x97   : > { %v283_v52 = vmul.f32 %v418_v10, %v282_v51 }
  0x99   : > { %v285_v54 = vsub.f32 0.0, %v283_v52 }
  0x9b   : > { %v286_v55 = vadd.f32 %v285_v54, %v244_v53 }
  0x9d   : > { %290 = vst [vmem:[%s215_s29] sm:$0xff] %v286_v55 }
  0x9e   : > { %586 = shalt.err (!%p583_p9)
}
  0x9f   : > { %s587_s18 = scalar_lea.hbm %s859_s27, 128  ;;  %s591_s5 = scalar_lea.hbm %s910_s2, 256 }
  0xa0   : > { %p588_p4 = scmp.ne.s32.totalorder %s859_s27, %s587_s18  ;;  %p592_p3 = scmp.lt.u32.totalorder %s859_s27, %s910_s2 }
  0xa1   : > { %p593_p13 = scmp.lt.u32.totalorder %s591_s5, %s587_s18  ;;  %p595_p0 = scmp.lt.u32.totalorder %s587_s18, %s859_s27 }
  0xa2   : > { %p589_p10 = pnand %p588_p4, %p921_p2 }
  0xa3   : > { %p594_p8 = por %p593_p13, %p592_p3 }
  0xa4   : > { %p590_p1 = pneg %p589_p10 }
  0xa5   : > { %p596_p11 = por %p595_p0, %p594_p8 }
  0xa7   : > { %p597_p5 = pnand %p596_p11, %p590_p1 }
  0xa9   : > { %600 = shalt.err (!%p597_p5)
}
  0xaa   : > { %432 = dma.vmem_to_hbm [thread:$0]  (%p921_p2), %s861_s3, 128, %s859_s27, %s292_s7  }
  0xab PF: > { %s317_s16 = sand.u32 1, %s639_s9   ;;  %p922_p6 = scmp.ne.s32.totalorder %s916_s24, 0 }
  0xac   : > { %p923_p7 = scmp.ge.s32.totalorder %s659_s14, 2  ;;  %s318_s20 = scalar_lea.sflag [#allocation4], %s317_s16 }
  0xae   : > { %p442_p12 = pnand %p923_p7, %p922_p6 }
  0xb0   : > { %634 = dma.done.wait (!%p442_p12), %s318_s20, 128  }
  0xb1   : > { %636 = vsyncadd (!%p442_p12), %s318_s20, 4294967168  ;;  %s21_s14 = sadd.s32 1, %s659_s14   ;;  %s924_s9 = smov %s643_s10 }
  0xb2   : > { %p18_p9 = scmp.ge.s32.totalorder %s21_s14, 4   ;;  %s925_s10 = smov %s647_s11 }
  0xb3   : > { %s926_s11 = smov %s739_s23  ;;  %s927_s12 = smov %s655_s13 }
  0xb4   : > { %s928_s13 = smov %s930_s17  ;;  %20 = sbr.rel (!%p18_p9) target bundleno = 8 (0x8), region = 92 }
  0xbb   :  { %323 = vsyncpa [#allocation3], 1 }
  0xbc   :  { %325 = vsyncpa [#allocation3 + $0x1], 1 }
  0xbd   :  { %326 = vsyncpa [#allocation6], 1 }
  0xbe   :  { %328 = vsyncpa [#allocation6 + $0x1], 1 }
  0xbf   :  { %329 = vsyncpa [#allocation4], 1 }
  0xc0   :  { %331 = vsyncpa [#allocation4 + $0x1], 1 }

</bundles_post_ra>
